<compile_context>
chip_gen: v6e
topology: v6e:2x2x1
jax: 0.10.0
libtpu: 0.0.40
codegen_flags: <defaults>
</compile_context>

<pallas_src>
import functools

import jax
import jax.numpy as jnp
from jax.experimental import pallas as pl
from jax.experimental.pallas import tpu as pltpu


# ---------------------------------------------------------------------------
# Fused kernel: wall-segment MLP(s) + pol MLP, x resident in VMEM scratch.
# ---------------------------------------------------------------------------
def _wall_dqn_kernel(x_ref, ww1_ref, wb1_ref, ww2_ref, wb2_ref,
                     pw1_ref, pb1_ref, pw2_ref, pb2_ref,
                     o_ref, x_scratch,
                     *, wall_start, wall_dim, segments_disjoint):
    # Working copy of this batch tile of x (VMEM scratch, overwritten in place).
    x_scratch[...] = x_ref[...]
    tb = x_scratch.shape[0]

    # Hoist wall weights/biases once (JAX does not CSE broadcasts in loops).
    ww1 = ww1_ref[...]
    wb1 = wb1_ref[...]
    ww2 = ww2_ref[...]
    wb2 = wb2_ref[...]

    def wall_mlp(seg):
        h = jnp.maximum(
            jnp.dot(seg, ww1, preferred_element_type=jnp.float32) + wb1, 0.0)
        return jnp.dot(h, ww2, preferred_element_type=jnp.float32) + wb2

    if segments_disjoint and len(wall_start) > 1:
        # Batch all disjoint segments into one MLP pass: (n_seg*tb, wall_dim).
        segs = jnp.concatenate(
            [x_scratch[:, i:i + wall_dim] for i in wall_start], axis=0)
        seg_out = wall_mlp(segs)
        for n, i in enumerate(wall_start):
            x_scratch[:, i:i + wall_dim] = (
                seg_out[n * tb:(n + 1) * tb, :].astype(x_scratch.dtype))
    else:
        # Sequential fallback: preserves PyTorch semantics if segments overlap
        # (each later segment sees earlier overwrites).
        for i in wall_start:
            seg_out = wall_mlp(x_scratch[:, i:i + wall_dim])
            x_scratch[:, i:i + wall_dim] = seg_out.astype(x_scratch.dtype)

    # pol_net on the updated x; output projection is lane-padded (128 cols),
    # so this store is lane-dense (unmasked vst).
    xf = x_scratch[...]
    hp = jnp.maximum(
        jnp.dot(xf, pw1_ref[...], preferred_element_type=jnp.float32)
        + pb1_ref[...], 0.0)
    y = (jnp.dot(hp, pw2_ref[...], preferred_element_type=jnp.float32)
         + pb2_ref[...])
    o_ref[...] = y.astype(o_ref.dtype)


def _segments_disjoint(wall_start, wall_dim):
    starts = sorted(int(i) for i in wall_start)
    return all(starts[k] + wall_dim <= starts[k + 1]
               for k in range(len(starts) - 1))


# ---------------------------------------------------------------------------
# Wrapper: single pallas_call for the whole WallDQN forward.
# ---------------------------------------------------------------------------
def wall_dqn_forward(x, params, *, wall_dim, wall_start, out_dim,
                     batch_tile=512):
    batch, in_dim = x.shape
    ww1, wb1, ww2, wb2 = params["wall"]
    pw1, pb1, pw2, pb2 = params["pol"]          # pw2/pb2 already lane-padded
    out_pad = pw2.shape[1]

    # Batch tile: sized conservatively against v7x's 64 MiB physical VMEM
    # (irrelevant at toy shapes, matters when RL batches scale up).
    tb = min(batch, batch_tile)
    grid = (pl.cdiv(batch, tb),)

    kernel = functools.partial(
        _wall_dqn_kernel,
        wall_start=tuple(int(i) for i in wall_start),
        wall_dim=int(wall_dim),
        segments_disjoint=_segments_disjoint(wall_start, wall_dim))

    def full_block(a):
        return pl.BlockSpec(a.shape, lambda b: (0,) * a.ndim)

    y_pad = pl.pallas_call(
        kernel,
        out_shape=jax.ShapeDtypeStruct((batch, out_pad), x.dtype),
        grid=grid,
        in_specs=[
            pl.BlockSpec((tb, in_dim), lambda b: (b, 0)),   # x (batch-tiled)
            full_block(ww1), full_block(wb1),
            full_block(ww2), full_block(wb2),
            full_block(pw1), full_block(pb1),
            full_block(pw2), full_block(pb2),
        ],
        out_specs=pl.BlockSpec((tb, out_pad), lambda b: (b, 0)),
        scratch_shapes=[pltpu.VMEM((tb, in_dim), x.dtype)],
        compiler_params=pltpu.CompilerParams(
            dimension_semantics=("parallel",)),   # v7x: 2 TCs split the batch
    )(x, ww1, wb1, ww2, wb2, pw1, pb1, pw2, pb2)

    return y_pad[:, :out_dim]


# ---------------------------------------------------------------------------
# Deterministic parameter init (PyTorch nn.Linear default U(-1/sqrt(fan_in),+)).
# Weights stored pre-transposed (in_dim, out_dim); biases stored as (1, N).
# pol W2/b2 zero-padded to a multiple of 128 output columns (lane-dense store).
# ---------------------------------------------------------------------------
def _init_linear(key, in_dim, out_dim, dtype=jnp.float32):
    kw, kb = jax.random.split(key)
    bound = 1.0 / (float(in_dim) ** 0.5)
    w = jax.random.uniform(kw, (in_dim, out_dim), dtype, -bound, bound)
    b = jax.random.uniform(kb, (1, out_dim), dtype, -bound, bound)
    return w, b


def init_wall_dqn_params(key, in_dim, out_dim, wall_dim, hidden_dim=None,
                         dtype=jnp.float32, lane=128):
    if hidden_dim is None:
        hidden_dim = max(in_dim, out_dim)
    # TODO(synk): only the default single-hidden-layer DQN config is fused here;
    # multi-element hidden_dim lists (extra Linear+ReLU stages) are not handled.
    k1, k2, k3, k4 = jax.random.split(key, 4)
    # wall_net: DQN(wall_dim, wall_dim, [2*wall_dim])
    ww1, wb1 = _init_linear(k1, wall_dim, 2 * wall_dim, dtype)
    ww2, wb2 = _init_linear(k2, 2 * wall_dim, wall_dim, dtype)
    # pol_net: DQN(in_dim, out_dim, [max(in_dim, out_dim)])
    pw1, pb1 = _init_linear(k3, in_dim, hidden_dim, dtype)
    pw2, pb2 = _init_linear(k4, hidden_dim, out_dim, dtype)
    # Lane-dense padding of the output projection (out_dim -> multiple of 128).
    out_pad = max(lane, pl.cdiv(out_dim, lane) * lane)
    pw2p = jnp.zeros((hidden_dim, out_pad), dtype).at[:, :out_dim].set(pw2)
    pb2p = jnp.zeros((1, out_pad), dtype).at[:, :out_dim].set(pb2)
    return {"wall": (ww1, wb1, ww2, wb2), "pol": (pw1, pb1, pw2p, pb2p)}


# ---------------------------------------------------------------------------
# Pure-jnp reference (sequential segment updates, exactly mirrors PyTorch).
# ---------------------------------------------------------------------------
def _ref_forward(x, params, wall_dim, wall_start, out_dim):
    ww1, wb1, ww2, wb2 = params["wall"]
    pw1, pb1, pw2, pb2 = params["pol"]
    for i in wall_start:
        seg = x[..., i:i + wall_dim]
        h = jnp.maximum(seg @ ww1 + wb1, 0.0)
        x = x.at[..., i:i + wall_dim].set(h @ ww2 + wb2)
    h = jnp.maximum(x @ pw1 + pb1, 0.0)
    return (h @ pw2 + pb2)[:, :out_dim]


if __name__ == "__main__":
    BATCH = 8
    IN_DIM = 32
    OUT_DIM = 4
    WALL_DIM = 8
    WALL_START = (0, 16)   # two disjoint wall segments inside the 32-dim state

    key = jax.random.PRNGKey(0)
    kx, kp = jax.random.split(key)
    x = jax.random.normal(kx, (BATCH, IN_DIM), jnp.float32)
    params = init_wall_dqn_params(kp, IN_DIM, OUT_DIM, WALL_DIM)

    fwd = jax.jit(functools.partial(
        wall_dqn_forward, wall_dim=WALL_DIM, wall_start=WALL_START,
        out_dim=OUT_DIM))
    out = fwd(x, params)
    jax.block_until_ready(out)

    ref = _ref_forward(x, params, WALL_DIM, WALL_START, OUT_DIM)
    assert out.shape == (BATCH, OUT_DIM)
    assert jnp.allclose(out, ref, atol=2e-5, rtol=2e-5), "mismatch vs jnp reference"

    print("KERNEL_OK")
</pallas_src>

<mosaic_0001>
module attributes {stable_mosaic.version = 11 : i64} {
  func.func @_wall_dqn_kernel(%arg0: i32, %arg1: memref<8x32xf32, #tpu.memory_space<vmem>>, %arg2: memref<8x16xf32, #tpu.memory_space<vmem>>, %arg3: memref<1x16xf32, #tpu.memory_space<vmem>>, %arg4: memref<16x8xf32, #tpu.memory_space<vmem>>, %arg5: memref<1x8xf32, #tpu.memory_space<vmem>>, %arg6: memref<32x32xf32, #tpu.memory_space<vmem>>, %arg7: memref<1x32xf32, #tpu.memory_space<vmem>>, %arg8: memref<32x128xf32, #tpu.memory_space<vmem>>, %arg9: memref<1x128xf32, #tpu.memory_space<vmem>>, %arg10: memref<8x128xf32, #tpu.memory_space<vmem>>, %arg11: memref<8x32xf32, #tpu.memory_space<vmem>>) attributes {dimension_semantics = [#tpu.dimension_semantics<parallel>], iteration_bounds = array<i64: 1>, scalar_prefetch = 0 : i64, scratch_operands = 1 : i64, tpu.core_type = #tpu.core_type<tc>, window_params = [{transform_indices = @transform_0, window_bounds = array<i64: 8, 32>}, {pipeline_mode = #tpu.pipeline_mode<synchronous>, transform_indices = @transform_1, window_bounds = array<i64: 8, 16>}, {pipeline_mode = #tpu.pipeline_mode<synchronous>, transform_indices = @transform_2, window_bounds = array<i64: 1, 16>}, {pipeline_mode = #tpu.pipeline_mode<synchronous>, transform_indices = @transform_3, window_bounds = array<i64: 16, 8>}, {pipeline_mode = #tpu.pipeline_mode<synchronous>, transform_indices = @transform_4, window_bounds = array<i64: 1, 8>}, {pipeline_mode = #tpu.pipeline_mode<synchronous>, transform_indices = @transform_5, window_bounds = array<i64: 32, 32>}, {pipeline_mode = #tpu.pipeline_mode<synchronous>, transform_indices = @transform_6, window_bounds = array<i64: 1, 32>}, {pipeline_mode = #tpu.pipeline_mode<synchronous>, transform_indices = @transform_7, window_bounds = array<i64: 32, 128>}, {pipeline_mode = #tpu.pipeline_mode<synchronous>, transform_indices = @transform_8, window_bounds = array<i64: 1, 128>}, {transform_indices = @transform_9, window_bounds = array<i64: 8, 128>}]} {
    %c0 = arith.constant 0 : index
    %c0_0 = arith.constant 0 : index
    %0 = vector.load %arg1[%c0, %c0_0] : memref<8x32xf32, #tpu.memory_space<vmem>>, vector<8x32xf32>
    %c0_1 = arith.constant 0 : index
    %c0_2 = arith.constant 0 : index
    %1 = vector.load %arg11[%c0_1, %c0_2] : memref<8x32xf32, #tpu.memory_space<vmem>>, vector<8x32xf32>
    tpu.vector_store %arg11[%c0_1, %c0_2], %0 {strides = array<i32>} : memref<8x32xf32, #tpu.memory_space<vmem>>, vector<8x32xf32>,
    %c0_3 = arith.constant 0 : index
    %c0_4 = arith.constant 0 : index
    %2 = vector.load %arg2[%c0_3, %c0_4] : memref<8x16xf32, #tpu.memory_space<vmem>>, vector<8x16xf32>
    %c0_5 = arith.constant 0 : index
    %c0_6 = arith.constant 0 : index
    %3 = vector.load %arg3[%c0_5, %c0_6] : memref<1x16xf32, #tpu.memory_space<vmem>>, vector<1x16xf32>
    %c0_7 = arith.constant 0 : index
    %c0_8 = arith.constant 0 : index
    %4 = vector.load %arg4[%c0_7, %c0_8] : memref<16x8xf32, #tpu.memory_space<vmem>>, vector<16x8xf32>
    %c0_9 = arith.constant 0 : index
    %c0_10 = arith.constant 0 : index
    %5 = vector.load %arg5[%c0_9, %c0_10] : memref<1x8xf32, #tpu.memory_space<vmem>>, vector<1x8xf32>
    %c0_11 = arith.constant 0 : index
    %c0_12 = arith.constant 0 : index
    %6 = vector.load %arg11[%c0_11, %c0_12] : memref<8x32xf32, #tpu.memory_space<vmem>>, vector<8x8xf32>
    %c0_13 = arith.constant 0 : index
    %c16 = arith.constant 16 : index
    %7 = vector.load %arg11[%c0_13, %c16] : memref<8x32xf32, #tpu.memory_space<vmem>>, vector<8x8xf32>
    %8 = tpu.concatenate %6, %7 in 0 : vector<8x8xf32>, vector<8x8xf32> -> vector<16x8xf32>
    %cst = arith.constant dense<0.000000e+00> : vector<16x16xf32>
    %9 = tpu.matmul %8, %2, %cst {dimension_numbers = #tpu.dot_dimension_numbers<[1], [0], [0], [1], [0, 0, 1, 1], [], []>} : vector<16x8xf32>, vector<8x16xf32>, vector<16x16xf32> -> vector<16x16xf32>
    %10 = vector.broadcast %3 : vector<1x16xf32> to vector<16x16xf32>
    %11 = arith.addf %9, %10 : vector<16x16xf32>
    %cst_14 = arith.constant 0.000000e+00 : f32
    %12 = vector.broadcast %cst_14 : f32 to vector<16x16xf32>
    %13 = arith.maximumf %11, %12 : vector<16x16xf32>
    %cst_15 = arith.constant dense<0.000000e+00> : vector<16x8xf32>
    %14 = tpu.matmul %13, %4, %cst_15 {dimension_numbers = #tpu.dot_dimension_numbers<[1], [0], [0], [1], [0, 0, 1, 1], [], []>} : vector<16x16xf32>, vector<16x8xf32>, vector<16x8xf32> -> vector<16x8xf32>
    %15 = vector.broadcast %5 : vector<1x8xf32> to vector<16x8xf32>
    %16 = arith.addf %14, %15 : vector<16x8xf32>
    %17 = vector.extract_strided_slice %16 {offsets = [0, 0], sizes = [8, 8], strides = [1, 1]} : vector<16x8xf32> to vector<8x8xf32>
    %c0_16 = arith.constant 0 : index
    %c0_17 = arith.constant 0 : index
    %18 = vector.load %arg11[%c0_16, %c0_17] : memref<8x32xf32, #tpu.memory_space<vmem>>, vector<8x8xf32>
    tpu.vector_store %arg11[%c0_16, %c0_17], %17 {strides = array<i32>} : memref<8x32xf32, #tpu.memory_space<vmem>>, vector<8x8xf32>,
    %19 = vector.extract_strided_slice %16 {offsets = [8, 0], sizes = [8, 8], strides = [1, 1]} : vector<16x8xf32> to vector<8x8xf32>
    %c0_18 = arith.constant 0 : index
    %c16_19 = arith.constant 16 : index
    %20 = vector.load %arg11[%c0_18, %c16_19] : memref<8x32xf32, #tpu.memory_space<vmem>>, vector<8x8xf32>
    tpu.vector_store %arg11[%c0_18, %c16_19], %19 {strides = array<i32>} : memref<8x32xf32, #tpu.memory_space<vmem>>, vector<8x8xf32>,
    %c0_20 = arith.constant 0 : index
    %c0_21 = arith.constant 0 : index
    %21 = vector.load %arg11[%c0_20, %c0_21] : memref<8x32xf32, #tpu.memory_space<vmem>>, vector<8x32xf32>
    %c0_22 = arith.constant 0 : index
    %c0_23 = arith.constant 0 : index
    %22 = vector.load %arg6[%c0_22, %c0_23] : memref<32x32xf32, #tpu.memory_space<vmem>>, vector<32x32xf32>
    %cst_24 = arith.constant dense<0.000000e+00> : vector<8x32xf32>
    %23 = tpu.matmul %21, %22, %cst_24 {dimension_numbers = #tpu.dot_dimension_numbers<[1], [0], [0], [1], [0, 0, 1, 1], [], []>} : vector<8x32xf32>, vector<32x32xf32>, vector<8x32xf32> -> vector<8x32xf32>
    %c0_25 = arith.constant 0 : index
    %c0_26 = arith.constant 0 : index
    %24 = vector.load %arg7[%c0_25, %c0_26] : memref<1x32xf32, #tpu.memory_space<vmem>>, vector<1x32xf32>
    %25 = vector.broadcast %24 : vector<1x32xf32> to vector<8x32xf32>
    %26 = arith.addf %23, %25 : vector<8x32xf32>
    %cst_27 = arith.constant 0.000000e+00 : f32
    %27 = vector.broadcast %cst_27 : f32 to vector<8x32xf32>
    %28 = arith.maximumf %26, %27 : vector<8x32xf32>
    %c0_28 = arith.constant 0 : index
    %c0_29 = arith.constant 0 : index
    %29 = vector.load %arg8[%c0_28, %c0_29] : memref<32x128xf32, #tpu.memory_space<vmem>>, vector<32x128xf32>
    %cst_30 = arith.constant dense<0.000000e+00> : vector<8x128xf32>
    %30 = tpu.matmul %28, %29, %cst_30 {dimension_numbers = #tpu.dot_dimension_numbers<[1], [0], [0], [1], [0, 0, 1, 1], [], []>} : vector<8x32xf32>, vector<32x128xf32>, vector<8x128xf32> -> vector<8x128xf32>
    %c0_31 = arith.constant 0 : index
    %c0_32 = arith.constant 0 : index
    %31 = vector.load %arg9[%c0_31, %c0_32] : memref<1x128xf32, #tpu.memory_space<vmem>>, vector<1x128xf32>
    %32 = vector.broadcast %31 : vector<1x128xf32> to vector<8x128xf32>
    %33 = arith.addf %30, %32 : vector<8x128xf32>
    %c0_33 = arith.constant 0 : index
    %c0_34 = arith.constant 0 : index
    %34 = vector.load %arg10[%c0_33, %c0_34] : memref<8x128xf32, #tpu.memory_space<vmem>>, vector<8x128xf32>
    tpu.vector_store %arg10[%c0_33, %c0_34], %33 {strides = array<i32>} : memref<8x128xf32, #tpu.memory_space<vmem>>, vector<8x128xf32>,
    return
  }
  func.func @transform_0(%arg0: i32) -> (i32, i32) {
    %c0_i32 = arith.constant 0 : i32
    %c0_i32_0 = arith.constant 0 : i32
    return %arg0, %c0_i32 : i32, i32
  }
  func.func @transform_1(%arg0: i32) -> (i32, i32) {
    %c0_i32 = arith.constant 0 : i32
    %c0_i32_0 = arith.constant 0 : i32
    %c0_i32_1 = arith.constant 0 : i32
    return %c0_i32, %c0_i32_0 : i32, i32
  }
  func.func @transform_2(%arg0: i32) -> (i32, i32) {
    %c0_i32 = arith.constant 0 : i32
    %c0_i32_0 = arith.constant 0 : i32
    %c0_i32_1 = arith.constant 0 : i32
    return %c0_i32, %c0_i32_0 : i32, i32
  }
  func.func @transform_3(%arg0: i32) -> (i32, i32) {
    %c0_i32 = arith.constant 0 : i32
    %c0_i32_0 = arith.constant 0 : i32
    %c0_i32_1 = arith.constant 0 : i32
    return %c0_i32, %c0_i32_0 : i32, i32
  }
  func.func @transform_4(%arg0: i32) -> (i32, i32) {
    %c0_i32 = arith.constant 0 : i32
    %c0_i32_0 = arith.constant 0 : i32
    %c0_i32_1 = arith.constant 0 : i32
    return %c0_i32, %c0_i32_0 : i32, i32
  }
  func.func @transform_5(%arg0: i32) -> (i32, i32) {
    %c0_i32 = arith.constant 0 : i32
    %c0_i32_0 = arith.constant 0 : i32
    %c0_i32_1 = arith.constant 0 : i32
    return %c0_i32, %c0_i32_0 : i32, i32
  }
  func.func @transform_6(%arg0: i32) -> (i32, i32) {
    %c0_i32 = arith.constant 0 : i32
    %c0_i32_0 = arith.constant 0 : i32
    %c0_i32_1 = arith.constant 0 : i32
    return %c0_i32, %c0_i32_0 : i32, i32
  }
  func.func @transform_7(%arg0: i32) -> (i32, i32) {
    %c0_i32 = arith.constant 0 : i32
    %c0_i32_0 = arith.constant 0 : i32
    %c0_i32_1 = arith.constant 0 : i32
    return %c0_i32, %c0_i32_0 : i32, i32
  }
  func.func @transform_8(%arg0: i32) -> (i32, i32) {
    %c0_i32 = arith.constant 0 : i32
    %c0_i32_0 = arith.constant 0 : i32
    %c0_i32_1 = arith.constant 0 : i32
    return %c0_i32, %c0_i32_0 : i32, i32
  }
  func.func @transform_9(%arg0: i32) -> (i32, i32) {
    %c0_i32 = arith.constant 0 : i32
    %c0_i32_0 = arith.constant 0 : i32
    return %arg0, %c0_i32 : i32, i32
  }
}

</mosaic_0001>

<bundles_post_ra>
// kernel: wall_dqn_forward.1
= control target key start
LH: loop header
LB: loop body
LE: loop exit
PB: predicated region body
PF: predicated region fallthrough
CT: control target
= control target key end

     0   :  { %14 = vsyncpa [#allocation4], 0  ;;  %s642_s0 = inlined_call_operand.vmem [shape: f32[8,32], index: 0, kind: input, shape index: {}]   ;;  %s643_s1 = inlined_call_operand.vmem [shape: f32[8,16], index: 1, kind: input, shape index: {}]   ;;  %s644_s2 = inlined_call_operand.vmem [shape: f32[1,16], index: 2, kind: input, shape index: {}]   ;;  %s645_s3 = inlined_call_operand.vmem [shape: f32[16,8], index: 3, kind: input, shape index: {}]   ;;  %s646_s4 = inlined_call_operand.vmem [shape: f32[1,8], index: 4, kind: input, shape index: {}]   ;;  %s647_s5 = inlined_call_operand.hbm [shape: f32[32,32], index: 5, kind: input, shape index: {}]   ;;  %s648_s6 = inlined_call_operand.vmem [shape: f32[1,32], index: 6, kind: input, shape index: {}]   ;;  %s649_s7 = inlined_call_operand.hbm [shape: f32[32,128], index: 7, kind: input, shape index: {}]   ;;  %s650_s8 = inlined_call_operand.vmem [shape: f32[1,128], index: 8, kind: input, shape index: {}]   ;;  %s651_s9 = inlined_call_operand.vmem [shape: f32[8,128], index: 9, kind: output, shape index: {}]  }
   0x1   :  { %15 = vsyncpa [#allocation6], 0  ;;  %s545_s30 = smov [#allocation3]  }
   0x2   :  { %s31_s10 = sshll.u32 %s545_s30, 4  ;;  %s32_s10 = int_to_ptr.vmem [resolvable:$true] %s31_s10 }
   0x3   :  { %s509_s11 = scalar_lea.vmem %s32_s10, 512  ;;  %p514_p1 = scmp.lt.s32.totalorder %s32_s10, %s32_s10 }
   0x4   :  { %p510_p0 = scmp.ne.s32.totalorder %s32_s10, %s509_s11  ;;  %p515_p2 = scmp.lt.s32.totalorder %s509_s11, %s509_s11 }
   0x6   :  { %p516_p3 = por %p515_p2, %p514_p1 }
   0x8   :  { %p517_p4 = pnand %p516_p3, %p510_p0 }
   0xa   :  { %520 = shalt.err (!%p517_p4)
}
   0xb   :  { %s546_s12 = smov 128   ;;  %s547_s13 = smov 8  }
   0xc   :  { %37 = dma.hbm_to_vmem [thread:$0]  %s647_s5, 512, %s32_s10, [#allocation4], %s546_s12, %s546_s12, %s547_s13  }
   0xd   :  { %s548_s16 = smov [#allocation5]  }
   0xe   :  { %s45_s17 = sshll.u32 %s548_s16, 4  ;;  %s46_s17 = int_to_ptr.vmem [resolvable:$true] %s45_s17 }
   0xf   :  { %s529_s18 = scalar_lea.vmem %s46_s17, 512  ;;  %p534_p6 = scmp.lt.s32.totalorder %s46_s17, %s46_s17 }
  0x10   :  { %p530_p5 = scmp.ne.s32.totalorder %s46_s17, %s529_s18  ;;  %p535_p7 = scmp.lt.s32.totalorder %s529_s18, %s529_s18 }
  0x12   :  { %p536_p8 = por %p535_p7, %p534_p6 }
  0x14   :  { %p537_p9 = pnand %p536_p8, %p530_p5 }
  0x16   :  { %540 = shalt.err (!%p537_p9)
}
  0x17   :  { %51 = dma.hbm_to_vmem [thread:$0]  %s649_s7, 512, %s46_s17, [#allocation6], %s546_s12, %s546_s12, %s547_s13  }
  0x18   :  { %541 = dma.done.wait [#allocation4], 512  }
  0x19   :  { %542 = vsyncadd [#allocation4], 4294966784 }
  0x1a   :  { %543 = dma.done.wait [#allocation6], 512  }
  0x1b   :  { %544 = vsyncadd [#allocation6], 4294966784  ;;  %vm61_vm0 = vcmask 261120   ;;  %v60_v0 = vld [vmem:[%s642_s0] sm:$0xff]  ;;  %vm78_vm1 = vcmask 64512   ;;  %s549_s7 = smov 112  }
  0x1c   :  { %v63_v1 = vld [vmem:[%s643_s1] sm:$0xff]  ;;  %62 = vst.msk [vmem:[#allocation2] sm:$0xff] %vm61_vm0, %v60_v0  ;;  %v66_v4 = vld [vmem:[%s645_s3 + $0x8] sm:$0xff]  ;;  %vm166_vm2 = vcmask 130048   ;;  %v550_v13 = vmov 0.0   ;;  %v258_v15 = vld [vmem:[#allocation3 + $0x10] sm:$0xff] }
  0x1d   :  { %459 = vmatprep.subr.mxu0 %v63_v1  ;;  %464 = vmatprep.subr.mxu1 %v66_v4  ;;  %v65_v5 = vld [vmem:[%s645_s3] sm:$0xff]  ;;  %vm551_vm3 = vmmov 0   ;;  %v257_v16 = vld [vmem:[#allocation3 + $0x8] sm:$0xff]  ;;  %v256_v17 = vld [vmem:[#allocation3] sm:$0xff]  ;;  %s552_s28 = smov 16   ;;  %vm253_vm4 = vcmask 195712  }
  0x1e   :  { %460 = vmatpush3.msra.mxu0 %v63_v1  ;;  %465 = vmatpush3.msra.mxu1 %v66_v4  ;;  %v432_v6 = vld [vmem:[%s644_s2] ss:$0 sm:$0xff]  ;;  %v343_v26 = vld [vmem:[#allocation5 + $0x10] sm:$0xff]  ;;  %v342_v27 = vld [vmem:[#allocation5 + $0x8] sm:$0xff] }
  0x1f   :  { %466 = vmatprep.subr.mxu1 %v65_v5  ;;  %471 = vmatprep.subr.mxu0 %v550_v13  ;;  %v259_v14 = vld [vmem:[#allocation3 + $0x18] sm:$0xff]  ;;  %v341_v28 = vld [vmem:[#allocation5] sm:$0xff] }
  0x20   :  { %467 = vmatpush3.msra.mxu1 %v65_v5  ;;  %v435_v18 = vld [vmem:[%s646_s4] ss:$0 sm:$0xff] }
  0x21   :  { %482 = vmatprep.subr.mxu1 %v550_v13  ;;  %v344_v19 = vld [vmem:[#allocation5 + $0x18] sm:$0xff] }
  0x22   :  { %v438_v29 = vld [vmem:[%s648_s6] ss:$0 sm:$0xff] }
  0x23   :  { %v68_v2 = vld [vmem:[#allocation2] sm:$0xff] }
  0x24   :  { %70 = vrot.lane.b32.xlu0 %v68_v2, %s549_s7  ;;  %461 = vmatprep.mubr.msk.f32.mxu0 %vm78_vm1, %v68_v2  ;;  %v440_v34 = vld [vmem:[%s650_s8] ss:$0 sm:$0xff] }
  0x96   :  { %v71_v3 = vpop.permute.xlu0 %70 }
  0x97   :  { %462 = vmatmul.mubr.msk.f32.vlgmr.msra.gmra.mxu0 %vm78_vm1, %v71_v3 }
  0x98   :  { %472 = vmatpush3.msra.mxu0 %v259_v14  ;;  %479 = vmatprep.mubr.msk.f32.mxu0 %vm551_vm3, %v550_v13 }
  0x99   :  { %473 = vmatprep.subr.mxu0 %v550_v13 }
  0x9a   :  { %474 = vmatpush3.msra.mxu0 %v258_v15 }
  0x9b   :  { %475 = vmatprep.subr.mxu0 %v550_v13 }
  0x9c   :  { %476 = vmatpush3.msra.mxu0 %v257_v16 }
  0x9d   :  { %477 = vmatprep.subr.mxu0 %v550_v13 }
  0x9e   :  { %478 = vmatpush3.msra.mxu0 %v256_v17 }
 0x157   :  { %v463_v7 = vpop.f32.mrf.mxu0 }
 0x158   :  { %v155_v8 = vadd.f32 %v463_v7, %v432_v6 }
 0x159   :  { %v149_v9 = vpop.f32.mrf.mxu0 }
 0x15a   :  { %v150_v10 = vadd.f32 %v432_v6, %v149_v9  ;;  %v159_v12 = vmax.f32 %v155_v8, 0.0 }
 0x15c   :  { %v158_v11 = vmax.f32 %v150_v10, 0.0 }
 0x15e   :  { %468 = vmatprep.mubr.msk.f32.mxu1 %vm166_vm2, %v158_v11 }
 0x15f   :  { %469 = vmatmul.mubr.msk.f32.vlgmr.msra.gmra.mxu1 %vm166_vm2, %v159_v12 }
 0x160   :  { %490 = vmatprep.mubr.msk.f32.mxu1 %vm551_vm3, %v550_v13  ;;  %483 = vmatpush3.msra.mxu1 %v344_v19 }
 0x161   :  { %484 = vmatprep.subr.mxu1 %v550_v13 }
 0x162   :  { %485 = vmatpush3.msra.mxu1 %v343_v26 }
 0x163   :  { %486 = vmatprep.subr.mxu1 %v550_v13 }
 0x164   :  { %487 = vmatpush3.msra.mxu1 %v342_v27 }
 0x165   :  { %488 = vmatprep.subr.mxu1 %v550_v13 }
 0x166   :  { %489 = vmatpush3.msra.mxu1 %v341_v28 }
 0x21f   :  { %v470_v20 = vpop.f32.mrf.mxu1 }
 0x220   :  { %v245_v21 = vadd.f32 %v470_v20, %v435_v18 }
 0x221   :  { %v239_v22 = vpop.f32.mrf.mxu1 }
 0x222   :  { %v240_v23 = vadd.f32 %v435_v18, %v239_v22  ;;  %250 = vrot.lane.b32.xlu0 %v245_v21, %s552_s28 }
 0x224   :  { %248 = vst.msk [vmem:[#allocation2] sm:$0xff] %vm78_vm1, %v240_v23 }
 0x294   :  { %v251_v24 = vpop.permute.xlu0 %250 }
 0x295   :  { %254 = vst.msk [vmem:[#allocation2] sm:$0xff] %vm253_vm4, %v251_v24 }
 0x29c   :  { %v255_v25 = vld [vmem:[#allocation2] sm:$0xff] }
 0x29d   :  { %480 = vmatmul.mubr.msk.f32.vlgmr.msra.gmra.mxu0 %vm61_vm0, %v255_v25 }
 0x35d   :  { %v336_v30 = vpop.f32.mrf.mxu0 }
 0x35e   :  { %v337_v31 = vadd.f32 %v438_v29, %v336_v30 }
 0x35f   :  { %v481_v32 = vpop.f32.mrf.mxu0 }
 0x360   :  { %v340_v33 = vmax.f32 %v337_v31, 0.0 }
 0x362   :  { %491 = vmatmul.mubr.msk.f32.vlgmr.msra.gmra.mxu1 %vm61_vm0, %v340_v33 }
 0x422   :  { %v421_v35 = vpop.f32.mrf.mxu1 }
 0x423   :  { %v422_v36 = vadd.f32 %v440_v34, %v421_v35 }
 0x424   :  { %v492_v37 = vpop.f32.mrf.mxu1 }
 0x425   :  { %425 = vst [vmem:[%s651_s9] sm:$0xff] %v422_v36 }
 0x426   :  { %430 = vsyncpa [#allocation4], 1 }
 0x427   :  { %431 = vsyncpa [#allocation6], 1 }

</bundles_post_ra>
